<compile_context>
chip_gen: v7x
topology: tpu7x:2x2x1
jax: 0.10.0
libtpu: 0.0.40
codegen_flags: <defaults>
</compile_context>

<pallas_src>
import functools

import jax
import jax.numpy as jnp
from jax.experimental import pallas as pl
from jax.experimental.pallas import tpu as pltpu


def _round_up(x, m):
    return ((x + m - 1) // m) * m


def qnet_kernel(x_ref, w1_ref, b1_ref, w2_ref, b2_ref, o_ref):
    # f32 -> bf16 cast of the x tile happens in-kernel (hidden under MXU/DMA
    # slack) instead of as a separate, un-hidden XLA op in the wrapper.
    x = x_ref[...].astype(jnp.bfloat16)
    # fc1 on the MXU: bf16 inputs, f32 accumulation.
    h = jnp.dot(x, w1_ref[...], preferred_element_type=jnp.float32)
    # Bias add + ReLU in f32 on the VPU (v5e has no bf16 VALUs).
    h = jnp.maximum(h + b1_ref[...], 0.0)
    # Deliberate downcast of the hidden activations for the second MXU pass.
    h = h.astype(jnp.bfloat16)
    # fc2 on the MXU: bf16 inputs, f32 accumulation, f32 bias add.
    out = jnp.dot(h, w2_ref[...], preferred_element_type=jnp.float32)
    o_ref[...] = (out + b2_ref[...]).astype(o_ref.dtype)


def prepare_qnet_params(w1, b1, w2, b2):
    """One-time parameter prep (do at init, NOT per forward call).

    * weights -> bf16 (halves weight DMA bytes, hits the bf16 MXU rate),
    * biases  -> f32 row vectors (added to the f32 accumulator),
    * action dim padded to a multiple of 128 so the output block stays
      lane-dense regardless of the real action_dim.
    """
    h, a = w2.shape
    a_pad = _round_up(a, 128)
    w1_bf = jnp.asarray(w1, jnp.bfloat16)
    w2_bf = jnp.pad(jnp.asarray(w2, jnp.float32),
                    ((0, 0), (0, a_pad - a))).astype(jnp.bfloat16)
    b1_2d = jnp.asarray(b1, jnp.float32).reshape(1, h)
    b2_2d = jnp.pad(jnp.asarray(b2, jnp.float32), (0, a_pad - a)).reshape(1, a_pad)
    return w1_bf, b1_2d, w2_bf, b2_2d


def _num_tensorcores():
    # v7x exposes 2 TensorCores per chip; v5e/v6e have 1. Fall back to 1 if
    # the device object does not expose a core count.
    try:
        return max(1, int(getattr(jax.devices()[0], "num_cores", 1)))
    except Exception:
        return 1


@functools.partial(jax.jit, static_argnames=("action_dim", "block_b", "min_tiles"))
def qnet_forward(x, w1_bf, b1, w2_bf, b2, *, action_dim=None, block_b=1024,
                 min_tiles=None):
    """relu(x @ w1 + b1) @ w2 + b2 (bf16 MXU inputs, f32 accumulation).

    x: (B, S) f32; w1_bf: (S, H) bf16; b1: (1, H) f32;
    w2_bf: (H, A_pad) bf16; b2: (1, A_pad) f32  (from prepare_qnet_params).
    Returns (B, action_dim) float32.
    """
    B, S = x.shape
    H = w1_bf.shape[1]
    A_pad = w2_bf.shape[1]
    A = A_pad if action_dim is None else action_dim

    if min_tiles is None:
        min_tiles = _num_tensorcores()

    # ---- batch tile selection --------------------------------------------
    # Working set: single-buffered bf16 weights + f32 biases (grid-invariant)
    # plus double-buffered f32 x / out tiles. Keep comfortably under the
    # smallest physical VMEM (64 MiB on v7x).
    fixed_bytes = 2 * (S * H + H * A_pad) + 4 * (H + A_pad)
    per_row_bytes = 2 * 4 * S + 2 * 4 * A_pad            # x + out, 2x buffered
    vmem_budget = 32 * 1024 * 1024
    tb_cap = max(8, ((vmem_budget - fixed_bytes) // per_row_bytes) // 8 * 8)

    b_pad8 = _round_up(B, 8)
    tb = min(_round_up(block_b, 8), b_pad8, tb_cap)
    if min_tiles > 1 and b_pad8 >= min_tiles * 8:
        # Keep >= min_tiles grid steps so the "parallel" axis can shard across
        # multiple TensorCores (v7x). Harmless on 1-TC chips.
        tb = min(tb, _round_up(-(-b_pad8 // min_tiles), 8))
    B_pad = _round_up(B, tb)

    if B_pad != B:
        x = jnp.pad(x, ((0, B_pad - B), (0, 0)))

    needed_vmem = fixed_bytes + per_row_bytes * tb
    vmem_limit = int(min(60 * 1024 * 1024,
                         max(needed_vmem + (2 << 20), 16 * 1024 * 1024)))

    cost = pl.CostEstimate(
        flops=2 * B_pad * S * H + 2 * B_pad * H * A_pad,
        transcendentals=0,
        bytes_accessed=(x.size * 4 + w1_bf.size * 2 + w2_bf.size * 2
                        + b1.size * 4 + b2.size * 4 + B_pad * A_pad * 4),
    )

    resident = dict(pipeline_mode=pl.Buffered(1))   # grid-invariant blocks

    out = pl.pallas_call(
        qnet_kernel,
        out_shape=jax.ShapeDtypeStruct((B_pad, A_pad), jnp.float32),
        grid_spec=pltpu.PrefetchScalarGridSpec(
            num_scalar_prefetch=0,
            grid=(B_pad // tb,),
            in_specs=[
                pl.BlockSpec((tb, S), lambda i: (i, 0)),                 # x
                pl.BlockSpec((S, H), lambda i: (0, 0), **resident),      # w1
                pl.BlockSpec((1, H), lambda i: (0, 0), **resident),      # b1
                pl.BlockSpec((H, A_pad), lambda i: (0, 0), **resident),  # w2
                pl.BlockSpec((1, A_pad), lambda i: (0, 0), **resident),  # b2
            ],
            out_specs=pl.BlockSpec((tb, A_pad), lambda i: (i, 0)),
        ),
        # Independent batch tiles -> shard grid across v7x's 2 TensorCores.
        compiler_params=pltpu.CompilerParams(
            dimension_semantics=("parallel",),
            vmem_limit_bytes=vmem_limit),
        cost_estimate=cost,
    )(x, w1_bf, b1, w2_bf, b2)

    if B_pad != B or A_pad != A:
        out = out[:B, :A]
    return out


def init_linear_params(key, in_features, out_features, dtype=jnp.float32):
    # Mimic PyTorch nn.Linear default init: U(-1/sqrt(fan_in), 1/sqrt(fan_in)).
    kw, kb = jax.random.split(key)
    bound = 1.0 / jnp.sqrt(jnp.asarray(in_features, dtype))
    # Stored as (in, out) so the kernel can do x @ W directly.
    w = jax.random.uniform(kw, (in_features, out_features), dtype,
                           minval=-bound, maxval=bound)
    b = jax.random.uniform(kb, (out_features,), dtype,
                           minval=-bound, maxval=bound)
    return w, b


if __name__ == "__main__":
    # Small shapes consistent with Qnet(state_dim, hidden_dim, action_dim).
    # action_dim deliberately NOT a multiple of 128 to exercise lane padding.
    batch = 64
    state_dim = 16
    hidden_dim = 128
    action_dim = 81

    key = jax.random.PRNGKey(0)
    kx, k1, k2 = jax.random.split(key, 3)

    x = jax.random.normal(kx, (batch, state_dim), jnp.float32)
    w1, b1 = init_linear_params(k1, state_dim, hidden_dim)
    w2, b2 = init_linear_params(k2, hidden_dim, action_dim)

    # One-time param prep (bf16 weights, padded action dim).
    params = prepare_qnet_params(w1, b1, w2, b2)

    out = qnet_forward(x, *params, action_dim=action_dim)
    out = jax.block_until_ready(out)
    assert out.shape == (batch, action_dim)

    # Reference 1: same bf16-input / f32-accumulate math in plain JAX.
    xb = x.astype(jnp.bfloat16)
    h_ref = jnp.maximum(
        jnp.dot(xb, w1.astype(jnp.bfloat16),
                preferred_element_type=jnp.float32) + b1, 0.0)
    ref_bf16 = jnp.dot(h_ref.astype(jnp.bfloat16), w2.astype(jnp.bfloat16),
                       preferred_element_type=jnp.float32) + b2
    assert jnp.allclose(out, ref_bf16, atol=2e-2, rtol=2e-2), \
        "mismatch vs bf16 reference"

    # Reference 2: full f32 PyTorch-equivalent forward (loose tol: bf16 inputs).
    ref_f32 = jnp.maximum(x @ w1 + b1, 0.0) @ w2 + b2
    assert jnp.allclose(out, ref_f32, atol=5e-2, rtol=5e-2), \
        "mismatch vs f32 reference"

    print("KERNEL_OK")
</pallas_src>

<mosaic_0001>
module attributes {stable_mosaic.version = 11 : i64} {
  func.func @qnet_kernel(%arg0: i32, %arg1: memref<64x16xf32, #tpu.memory_space<vmem>>, %arg2: memref<16x128xbf16, #tpu.memory_space<vmem>>, %arg3: memref<1x128xf32, #tpu.memory_space<vmem>>, %arg4: memref<128x128xbf16, #tpu.memory_space<vmem>>, %arg5: memref<1x128xf32, #tpu.memory_space<vmem>>, %arg6: memref<64x128xf32, #tpu.memory_space<vmem>>) attributes {dimension_semantics = [#tpu.dimension_semantics<parallel>], iteration_bounds = array<i64: 1>, scalar_prefetch = 0 : i64, scratch_operands = 0 : i64, tpu.core_type = #tpu.core_type<tc>, window_params = [{transform_indices = @transform_0, window_bounds = array<i64: 64, 16>}, {pipeline_mode = #tpu.pipeline_mode<synchronous>, transform_indices = @transform_1, window_bounds = array<i64: 16, 128>}, {pipeline_mode = #tpu.pipeline_mode<synchronous>, transform_indices = @transform_2, window_bounds = array<i64: 1, 128>}, {pipeline_mode = #tpu.pipeline_mode<synchronous>, transform_indices = @transform_3, window_bounds = array<i64: 128, 128>}, {pipeline_mode = #tpu.pipeline_mode<synchronous>, transform_indices = @transform_4, window_bounds = array<i64: 1, 128>}, {transform_indices = @transform_5, window_bounds = array<i64: 64, 128>}]} {
    %c0 = arith.constant 0 : index
    %c0_0 = arith.constant 0 : index
    %0 = vector.load %arg1[%c0, %c0_0] : memref<64x16xf32, #tpu.memory_space<vmem>>, vector<64x16xf32>
    %1 = arith.truncf %0 : vector<64x16xf32> to vector<64x16xbf16>
    %c0_1 = arith.constant 0 : index
    %c0_2 = arith.constant 0 : index
    %2 = vector.load %arg2[%c0_1, %c0_2] : memref<16x128xbf16, #tpu.memory_space<vmem>>, vector<16x128xbf16>
    %cst = arith.constant dense<0.000000e+00> : vector<64x128xf32>
    %3 = tpu.matmul %1, %2, %cst {dimension_numbers = #tpu.dot_dimension_numbers<[1], [0], [0], [1], [0, 0, 1, 1], [], []>} : vector<64x16xbf16>, vector<16x128xbf16>, vector<64x128xf32> -> vector<64x128xf32>
    %c0_3 = arith.constant 0 : index
    %c0_4 = arith.constant 0 : index
    %4 = vector.load %arg3[%c0_3, %c0_4] : memref<1x128xf32, #tpu.memory_space<vmem>>, vector<1x128xf32>
    %5 = vector.broadcast %4 : vector<1x128xf32> to vector<64x128xf32>
    %6 = arith.addf %3, %5 : vector<64x128xf32>
    %cst_5 = arith.constant 0.000000e+00 : f32
    %7 = vector.broadcast %cst_5 : f32 to vector<64x128xf32>
    %8 = arith.maximumf %6, %7 : vector<64x128xf32>
    %9 = arith.truncf %8 : vector<64x128xf32> to vector<64x128xbf16>
    %c0_6 = arith.constant 0 : index
    %c0_7 = arith.constant 0 : index
    %10 = vector.load %arg4[%c0_6, %c0_7] : memref<128x128xbf16, #tpu.memory_space<vmem>>, vector<128x128xbf16>
    %cst_8 = arith.constant dense<0.000000e+00> : vector<64x128xf32>
    %11 = tpu.matmul %9, %10, %cst_8 {dimension_numbers = #tpu.dot_dimension_numbers<[1], [0], [0], [1], [0, 0, 1, 1], [], []>} : vector<64x128xbf16>, vector<128x128xbf16>, vector<64x128xf32> -> vector<64x128xf32>
    %c0_9 = arith.constant 0 : index
    %c0_10 = arith.constant 0 : index
    %12 = vector.load %arg5[%c0_9, %c0_10] : memref<1x128xf32, #tpu.memory_space<vmem>>, vector<1x128xf32>
    %13 = vector.broadcast %12 : vector<1x128xf32> to vector<64x128xf32>
    %14 = arith.addf %11, %13 : vector<64x128xf32>
    %c0_11 = arith.constant 0 : index
    %c0_12 = arith.constant 0 : index
    %15 = vector.load %arg6[%c0_11, %c0_12] : memref<64x128xf32, #tpu.memory_space<vmem>>, vector<64x128xf32>
    tpu.vector_store %arg6[%c0_11, %c0_12], %14 {strides = array<i32>} : memref<64x128xf32, #tpu.memory_space<vmem>>, vector<64x128xf32>,
    return
  }
  func.func @transform_0(%arg0: i32) -> (i32, i32) {
    %c0_i32 = arith.constant 0 : i32
    %c0_i32_0 = arith.constant 0 : i32
    return %arg0, %c0_i32 : i32, i32
  }
  func.func @transform_1(%arg0: i32) -> (i32, i32) {
    %c0_i32 = arith.constant 0 : i32
    %c0_i32_0 = arith.constant 0 : i32
    %c0_i32_1 = arith.constant 0 : i32
    return %c0_i32, %c0_i32_0 : i32, i32
  }
  func.func @transform_2(%arg0: i32) -> (i32, i32) {
    %c0_i32 = arith.constant 0 : i32
    %c0_i32_0 = arith.constant 0 : i32
    %c0_i32_1 = arith.constant 0 : i32
    return %c0_i32, %c0_i32_0 : i32, i32
  }
  func.func @transform_3(%arg0: i32) -> (i32, i32) {
    %c0_i32 = arith.constant 0 : i32
    %c0_i32_0 = arith.constant 0 : i32
    %c0_i32_1 = arith.constant 0 : i32
    return %c0_i32, %c0_i32_0 : i32, i32
  }
  func.func @transform_4(%arg0: i32) -> (i32, i32) {
    %c0_i32 = arith.constant 0 : i32
    %c0_i32_0 = arith.constant 0 : i32
    %c0_i32_1 = arith.constant 0 : i32
    return %c0_i32, %c0_i32_0 : i32, i32
  }
  func.func @transform_5(%arg0: i32) -> (i32, i32) {
    %c0_i32 = arith.constant 0 : i32
    %c0_i32_0 = arith.constant 0 : i32
    return %arg0, %c0_i32 : i32, i32
  }
}

</mosaic_0001>

<bundles_post_ra>
// kernel: qnet_forward.1
= control target key start
LH: loop header
LB: loop body
LE: loop exit
PB: predicated region body
PF: predicated region fallthrough
CT: control target
= control target key end

     0   :  { %vm49_vm0 = vcmask 130048   ;;  %s523_s0 = inlined_call_operand.vmem [shape: f32[64,16], index: 0, kind: input, shape index: {}]   ;;  %s524_s1 = inlined_call_operand.vmem [shape: bf16[16,128], index: 1, kind: input, shape index: {}]   ;;  %s525_s2 = inlined_call_operand.vmem [shape: f32[1,128], index: 2, kind: input, shape index: {}]   ;;  %s526_s3 = inlined_call_operand.vmem [shape: bf16[128,128], index: 3, kind: input, shape index: {}]   ;;  %s527_s4 = inlined_call_operand.vmem [shape: f32[1,128], index: 4, kind: input, shape index: {}]   ;;  %s528_s5 = inlined_call_operand.hbm [shape: f32[64,128], index: 5, kind: output, shape index: {}]  }
   0x1   :  { %v384_v0 = vld [vmem:[%s524_s1] sm:$0xff]   ;;  %v23_v2 = vld [vmem:[%s523_s0 + $0x8] sm:$0xff]  ;;  %v24_v3 = vld [vmem:[%s523_s0 + $0x10] sm:$0xff] }
   0x2   :  { %v22_v1 = vld [vmem:[%s523_s0] sm:$0xff]  ;;  %331 = vmatprep.subr.bf16.mxu0 %v384_v0  ;;  %v25_v5 = vld [vmem:[%s523_s0 + $0x18] sm:$0xff]  ;;  %v27_v7 = vld [vmem:[%s523_s0 + $0x28] sm:$0xff] }
   0x3   :  { %v30_v4 = vpack.c.bf16 %v23_v2, %v22_v1  ;;  %v26_v6 = vld [vmem:[%s523_s0 + $0x20] sm:$0xff]  ;;  %332 = vmatpush3.bf16.msra.mxu0 %v384_v0  ;;  %v31_v8 = vpack.c.bf16 %v25_v5, %v24_v3  ;;  %v386_v11 = vld [vmem:[%s526_s3 + $0x8] sm:$0xff]   ;;  %v28_v12 = vld [vmem:[%s523_s0 + $0x30] sm:$0xff] }
   0x4   :  { %v32_v9 = vpack.c.bf16 %v27_v7, %v26_v6  ;;  %v385_v10 = vld [vmem:[%s526_s3] sm:$0xff]   ;;  %v29_v13 = vld [vmem:[%s523_s0 + $0x38] sm:$0xff]  ;;  %v387_v14 = vld [vmem:[%s526_s3 + $0x10] sm:$0xff]  }
   0x5   :  { %333 = vmatprep.mubr.msk.bf16.mxu0 %vm49_vm0, %v30_v4  ;;  %341 = vmatprep.subr.bf16.mxu0 %v385_v10  ;;  %v33_v15 = vpack.c.bf16 %v29_v13, %v28_v12 }
   0x6   :  { %334 = vmatmul.mubr.msk.bf16.vlgmr.msra.gmra.mrb[0].mxu0 %vm49_vm0, %v31_v8  ;;  %365 = vmatprep.subr.bf16.mxu1 %v385_v10 }
   0x7   :  { %337 = vmatprep.mubr.msk.bf16.mxu0 %vm49_vm0, %v32_v9  ;;  %342 = vmatpush3.bf16.msra.mxu0 %v385_v10 }
   0x8   :  { %343 = vmatprep.subr.bf16.mxu0 %v386_v11  ;;  %373 = vmatpush3.bf16.msra.mxu1 %v385_v10 }
   0x9   :  { %366 = vmatprep.subr.bf16.mxu1 %v386_v11 }
   0xb   :  { %344 = vmatpush3.bf16.msra.mxu0 %v386_v11 }
   0xc   :  { %10 = vsyncpa [#allocation3], 0  ;;  %345 = vmatprep.subr.bf16.mxu0 %v387_v14  ;;  %v388_v16 = vld [vmem:[%s526_s3 + $0x18] sm:$0xff]   ;;  %374 = vmatpush3.bf16.msra.mxu1 %v386_v11  ;;  %v389_v17 = vld [vmem:[%s526_s3 + $0x20] sm:$0xff]   ;;  %s417_s27 = smov [#allocation2]  }
   0xd   :  { %367 = vmatprep.subr.bf16.mxu1 %v387_v14  ;;  %v390_v18 = vld [vmem:[%s526_s3 + $0x28] sm:$0xff]   ;;  %v391_v19 = vld [vmem:[%s526_s3 + $0x30] sm:$0xff]   ;;  %v392_v20 = vld [vmem:[%s526_s3 + $0x38] sm:$0xff]   ;;  %s288_s1 = sshll.u32 %s417_s27, 4  ;;  %s289_s1 = int_to_ptr.vmem [resolvable:$true] %s288_s1 }
   0xe   :  { %338 = vmatmul.mubr.msk.bf16.gmra.mrb[4].mxu0 %vm49_vm0, %v33_v15  ;;  %v299_v21 = vld [vmem:[%s525_s2] ss:$0 sm:$0xff]  ;;  %p398_p1 = scmp.lt.s32.totalorder %s289_s1, %s289_s1 }
   0xf   :  { %346 = vmatpush3.bf16.msra.mxu0 %v387_v14  ;;  %v305_v50 = vld [vmem:[%s527_s4] ss:$0 sm:$0xff]  ;;  %s393_s4 = scalar_lea.vmem %s289_s1, 1024 }
  0x10   :  { %347 = vmatprep.subr.bf16.mxu0 %v388_v16  ;;  %375 = vmatpush3.bf16.msra.mxu1 %v387_v14  ;;  %p394_p0 = scmp.ne.s32.totalorder %s289_s1, %s393_s4  ;;  %p399_p2 = scmp.lt.s32.totalorder %s393_s4, %s393_s4 }
  0x11   :  { %368 = vmatprep.subr.bf16.mxu1 %v388_v16 }
  0x12   :  { %p400_p3 = por %p399_p2, %p398_p1 }
  0x13   :  { %348 = vmatpush3.bf16.msra.mxu0 %v388_v16 }
  0x14   :  { %349 = vmatprep.subr.bf16.mxu0 %v389_v17  ;;  %376 = vmatpush3.bf16.msra.mxu1 %v388_v16  ;;  %p401_p4 = pnand %p400_p3, %p394_p0 }
  0x15   :  { %369 = vmatprep.subr.bf16.mxu1 %v389_v17 }
  0x17   :  { %350 = vmatpush3.bf16.msra.mxu0 %v389_v17 }
  0x18   :  { %351 = vmatprep.subr.bf16.mxu0 %v390_v18  ;;  %377 = vmatpush3.bf16.msra.mxu1 %v389_v17 }
  0x19   :  { %370 = vmatprep.subr.bf16.mxu1 %v390_v18 }
  0x1b   :  { %352 = vmatpush3.bf16.msra.mxu0 %v390_v18 }
  0x1c   :  { %378 = vmatpush3.bf16.msra.mxu1 %v390_v18  ;;  %353 = vmatprep.subr.bf16.mxu0 %v391_v19 }
  0x1d   :  { %371 = vmatprep.subr.bf16.mxu1 %v391_v19 }
  0x1f   :  { %354 = vmatpush3.bf16.msra.mxu0 %v391_v19 }
  0x20   :  { %379 = vmatpush3.bf16.msra.mxu1 %v391_v19  ;;  %355 = vmatprep.subr.bf16.mxu0 %v392_v20 }
  0x21   :  { %372 = vmatprep.subr.bf16.mxu1 %v392_v20 }
  0x23   :  { %356 = vmatpush3.bf16.msra.mxu0 %v392_v20 }
  0x24   :  { %380 = vmatpush3.bf16.msra.mxu1 %v392_v20 }
  0xd9   :  { %v335_v22 = vpop.f32.mrb[0].mxu0 }
  0xda   :  { %v105_v23 = vadd.f32 %v335_v22, %v299_v21  ;;  %v96_v24 = vpop.f32.mrb[1].mxu0 }
  0xdb   :  { %v97_v25 = vadd.f32 %v299_v21, %v96_v24  ;;  %v336_v26 = vpop.f32.mrb[2].mxu0 }
  0xdc   :  { %v108_v27 = vadd.f32 %v336_v26, %v299_v21  ;;  %v99_v28 = vpop.f32.mrb[3].mxu0  ;;  %v129_v30 = vmax.f32 %v105_v23, 0.0 }
  0xdd   :  { %v100_v29 = vadd.f32 %v299_v21, %v99_v28  ;;  %v127_v32 = vmax.f32 %v97_v25, 0.0 }
  0xde   :  { %v130_v31 = vmax.f32 %v108_v27, 0.0 }
  0xdf   :  { %v128_v33 = vmax.f32 %v100_v29, 0.0 }
  0xe0   :  { %v136_v34 = vpack.c.bf16 %v130_v31, %v129_v30 }
  0xe1   :  { %v135_v35 = vpack.c.bf16 %v128_v33, %v127_v32  ;;  %v339_v36 = vpop.f32.mrb[4].mxu0 }
  0xe2   :  { %v121_v37 = vadd.f32 %v339_v36, %v299_v21  ;;  %v112_v38 = vpop.f32.mrb[5].mxu0 }
  0xe3   :  { %v113_v39 = vadd.f32 %v299_v21, %v112_v38  ;;  %v340_v40 = vpop.f32.mrb[6].mxu0  ;;  %357 = vmatprep.mubr.bf16.mxu0 %v135_v35 }
  0xe4   :  { %v124_v41 = vadd.f32 %v340_v40, %v299_v21  ;;  %v115_v42 = vpop.f32.mrb[7].mxu0  ;;  %358 = vmatmul.mubr.bf16.vlgmr.msra.gmra.mrb[8].mxu0 %v136_v34  ;;  %v133_v44 = vmax.f32 %v121_v37, 0.0 }
  0xe5   :  { %v116_v43 = vadd.f32 %v299_v21, %v115_v42  ;;  %v131_v46 = vmax.f32 %v113_v39, 0.0 }
  0xe6   :  { %v134_v45 = vmax.f32 %v124_v41, 0.0 }
  0xe7   :  { %v132_v47 = vmax.f32 %v116_v43, 0.0 }
  0xe8   :  { %v138_v48 = vpack.c.bf16 %v134_v45, %v133_v44 }
  0xe9   :  { %v137_v49 = vpack.c.bf16 %v132_v47, %v131_v46 }
  0xeb   :  { %361 = vmatprep.mubr.bf16.mxu1 %v137_v49 }
  0xec   :  { %362 = vmatmul.mubr.bf16.vlgmr.msra.gmra.mrb[0].mxu1 %v138_v48 }
 0x1b7   :  { %v359_v51 = vpop.f32.mrb[8].mxu0 }
 0x1b8   :  { %v253_v52 = vadd.f32 %v359_v51, %v305_v50  ;;  %v244_v53 = vpop.f32.mrb[9].mxu0 }
 0x1b9   :  { %v245_v54 = vadd.f32 %v305_v50, %v244_v53  ;;  %v360_v55 = vpop.f32.mrb[10].mxu0 }
 0x1ba   :  { %277 = vst [vmem:[#allocation2 + $0x10] sm:$0xff] %v253_v52  ;;  %v256_v56 = vadd.f32 %v360_v55, %v305_v50  ;;  %v247_v57 = vpop.f32.mrb[11].mxu0 }
 0x1bb   :  { %275 = vst [vmem:[#allocation2] sm:$0xff] %v245_v54  ;;  %v248_v58 = vadd.f32 %v305_v50, %v247_v57 }
 0x1bc   :  { %278 = vst [vmem:[#allocation2 + $0x18] sm:$0xff] %v256_v56 }
 0x1bd   :  { %276 = vst [vmem:[#allocation2 + $0x8] sm:$0xff] %v248_v58 }
 0x1bf   :  { %v363_v59 = vpop.f32.mrb[0].mxu1 }
 0x1c0   :  { %v269_v60 = vadd.f32 %v363_v59, %v305_v50  ;;  %v260_v61 = vpop.f32.mrb[1].mxu1 }
 0x1c1   :  { %v261_v62 = vadd.f32 %v305_v50, %v260_v61  ;;  %v364_v63 = vpop.f32.mrb[2].mxu1 }
 0x1c2   :  { %281 = vst [vmem:[#allocation2 + $0x30] sm:$0xff] %v269_v60  ;;  %v272_v0 = vadd.f32 %v364_v63, %v305_v50  ;;  %v263_v1 = vpop.f32.mrb[3].mxu1 }
 0x1c3   :  { %279 = vst [vmem:[#allocation2 + $0x20] sm:$0xff] %v261_v62  ;;  %v264_v2 = vadd.f32 %v305_v50, %v263_v1 }
 0x1c4   :  { %282 = vst [vmem:[#allocation2 + $0x38] sm:$0xff] %v272_v0 }
 0x1c5   :  { %280 = vst [vmem:[#allocation2 + $0x28] sm:$0xff] %v264_v2 }
 0x1c6   :  { %404 = shalt.err (!%p401_p4)
}
 0x1c7   :  { %s405_s30 = scalar_lea.hbm %s528_s5, 1024 }
 0x1c8   :  { %p406_p5 = scmp.ne.s32.totalorder %s528_s5, %s405_s30  ;;  %p409_p6 = scmp.lt.u32.totalorder %s405_s30, %s528_s5 }
 0x1ca   :  { %p411_p7 = pnand %p409_p6, %p406_p5 }
 0x1cc   :  { %414 = shalt.err (!%p411_p7)
}
 0x1cd   :  { %s418_s10 = smov 128   ;;  %s419_s11 = smov 8  }
 0x1ce   :  { %294 = dma.vmem_to_hbm [thread:$0]  %s289_s1, 1024, %s528_s5, [#allocation3], %s418_s10, %s418_s10, %s419_s11  }
 0x1cf   :  { %415 = dma.done.wait [#allocation3], 1024  }
 0x1d0   :  { %416 = vsyncadd [#allocation3], 4294966272 }
 0x1d1   :  { %298 = vsyncpa [#allocation3], 1 }

</bundles_post_ra>
